<compile_context>
chip_gen: v5e
topology: v5e:2x2
jax: 0.10.0
libtpu: 0.0.40
codegen_flags: <defaults>
</compile_context>

<pallas_src>
import jax
import jax.numpy as jnp
from jax.experimental import pallas as pl
from jax.experimental.pallas import tpu as pltpu


_LANE = 128
_SUBLANE = 8
# Per-input-buffer budget; double-buffered => ~12 MiB live, safe on v5e/v6e/v7x.
_PER_BUF_BUDGET = 6 * 1024 * 1024
# Raised above v5e's 16 MiB default scoped limit; well under v7x's 64 MiB physical.
_VMEM_LIMIT_BYTES = 32 * 1024 * 1024


def _round_up(x: int, m: int) -> int:
    return (x + m - 1) // m * m


def _pick_tiles(D: int, H: int, W: int, itemsize: int) -> tuple[int, int]:
    """Pick (TH, TW): lane-dense, sublane-aligned, <= _PER_BUF_BUDGET bytes."""
    # Lane (last) dim: multiple of 128, or full extent when W < 128
    # (a full-dim block bypasses the (8, 128) divisibility rule).
    if W < _LANE:
        TW = W
    else:
        TW = _LANE
        while (TW * 2 <= 1024
               and TW * 2 <= _round_up(W, _LANE)
               and D * _SUBLANE * (TW * 2) * itemsize <= _PER_BUF_BUDGET):
            TW *= 2
    # Sublane (second-minor) dim: multiple of 8, or full extent when H < 8.
    if H < _SUBLANE:
        TH = H
    else:
        TH = _SUBLANE
        while (TH * 2 <= 64
               and TH * 2 <= _round_up(H, _SUBLANE)
               and D * (TH * 2) * TW * itemsize <= _PER_BUF_BUDGET):
            TH *= 2
    return TH, TW


def _dispreg_kernel(x_ref, o_ref):
    # x_ref: (1, D, TH, TW) block in VMEM
    # o_ref: (1, 1, TH, TW) output block
    D = x_ref.shape[1]
    TH, TW = x_ref.shape[2], x_ref.shape[3]

    def body(k, acc):
        # One (TH, TW) disparity slice, weighted by its index; keeps the live
        # vreg working set to one tile + the accumulator (no D*TH*TW temp).
        w = k.astype(jnp.float32)
        return acc + x_ref[0, k, :, :].astype(jnp.float32) * w

    unroll = 8 if D % 8 == 0 else (4 if D % 4 == 0 else 1)
    acc = jax.lax.fori_loop(0, D, body,
                            jnp.zeros((TH, TW), jnp.float32),
                            unroll=unroll)
    o_ref[0, 0, :, :] = acc.astype(o_ref.dtype)


def disparity_regression(x: jax.Array, maxdisp: int) -> jax.Array:
    """x: (N, maxdisp, H, W) -> (N, 1, H, W), out[n,0,h,w] = sum_d d * x[n,d,h,w]."""
    N, D, H, W = x.shape
    assert D == maxdisp
    itemsize = jnp.dtype(x.dtype).itemsize

    TH, TW = _pick_tiles(D, H, W, itemsize)
    Hp = _round_up(H, TH)
    Wp = _round_up(W, TW)

    x_in = x
    if (Hp, Wp) != (H, W):
        # Zero padding contributes 0 to the weighted sum; sliced off below.
        x_in = jnp.pad(x, ((0, 0), (0, 0), (0, Hp - H), (0, Wp - W)))

    grid = (N, Hp // TH, Wp // TW)

    out = pl.pallas_call(
        _dispreg_kernel,
        out_shape=jax.ShapeDtypeStruct((N, 1, Hp, Wp), x.dtype),
        grid_spec=pltpu.PrefetchScalarGridSpec(
            num_scalar_prefetch=0,
            grid=grid,
            in_specs=[
                pl.BlockSpec((1, D, TH, TW), lambda n, h, w: (n, 0, h, w)),
            ],
            out_specs=pl.BlockSpec((1, 1, TH, TW), lambda n, h, w: (n, 0, h, w)),
        ),
        compiler_params=pltpu.CompilerParams(
            dimension_semantics=("parallel", "parallel", "parallel"),
            vmem_limit_bytes=_VMEM_LIMIT_BYTES,
        ),
    )(x_in)

    if (Hp, Wp) != (H, W):
        out = out[:, :, :H, :W]
    return out


def _reference(x: jax.Array, maxdisp: int) -> jax.Array:
    disp = jnp.arange(maxdisp, dtype=x.dtype).reshape(1, maxdisp, 1, 1)
    return jnp.sum(x * disp, axis=1, keepdims=True)


if __name__ == "__main__":
    key = jax.random.PRNGKey(0)
    k1, k2 = jax.random.split(key)

    # Small shape consistent with the module's forward (softmaxed cost volume).
    N, maxdisp, H, W = 2, 4, 16, 16
    logits = jax.random.normal(k1, (N, maxdisp, H, W), dtype=jnp.float32)
    x = jax.nn.softmax(logits, axis=1)

    out = disparity_regression(x, maxdisp)
    out = jax.block_until_ready(out)
    ref = _reference(x, maxdisp)
    assert out.shape == (N, 1, H, W)
    assert jnp.allclose(out, ref, atol=1e-5, rtol=1e-5)

    # Second small case exercising the tiled + ragged-edge (padding) path.
    N2, D2, H2, W2 = 1, 12, 24, 200
    logits2 = jax.random.normal(k2, (N2, D2, H2, W2), dtype=jnp.float32)
    x2 = jax.nn.softmax(logits2, axis=1)
    out2 = jax.block_until_ready(disparity_regression(x2, D2))
    ref2 = _reference(x2, D2)
    assert out2.shape == (N2, 1, H2, W2)
    assert jnp.allclose(out2, ref2, atol=1e-4, rtol=1e-5)

    print("KERNEL_OK")
</pallas_src>

<mosaic_0001>
module attributes {stable_mosaic.version = 11 : i64} {
  func.func @_dispreg_kernel(%arg0: i32, %arg1: i32, %arg2: i32, %arg3: memref<1x4x16x16xf32, #tpu.memory_space<vmem>>, %arg4: memref<1x1x16x16xf32, #tpu.memory_space<vmem>>) attributes {dimension_semantics = [#tpu.dimension_semantics<parallel>, #tpu.dimension_semantics<parallel>, #tpu.dimension_semantics<parallel>], iteration_bounds = array<i64: 2, 1, 1>, scalar_prefetch = 0 : i64, scratch_operands = 0 : i64, tpu.core_type = #tpu.core_type<tc>, window_params = [{transform_indices = @transform_0, window_bounds = array<i64: 1, 4, 16, 16>}, {transform_indices = @transform_1, window_bounds = array<i64: 1, 1, 16, 16>}]} {
    %cst = arith.constant 0.000000e+00 : f32
    %0 = vector.broadcast %cst : f32 to vector<16x16xf32>
    %c0_i32 = arith.constant 0 : i32
    %1 = arith.sitofp %c0_i32 : i32 to f32
    %c0 = arith.constant 0 : index
    %2 = arith.index_cast %c0_i32 : i32 to index
    %c0_0 = arith.constant 0 : index
    %c0_1 = arith.constant 0 : index
    %3 = vector.load %arg3[%c0, %2, %c0_0, %c0_1] : memref<1x4x16x16xf32, #tpu.memory_space<vmem>>, vector<1x1x16x16xf32>
    %4 = vector.shape_cast %3 : vector<1x1x16x16xf32> to vector<16x16xf32>
    %5 = vector.broadcast %1 : f32 to vector<16x16xf32>
    %6 = arith.mulf %4, %5 : vector<16x16xf32>
    %7 = arith.addf %0, %6 : vector<16x16xf32>
    %c1_i32 = arith.constant 1 : i32
    %8 = arith.sitofp %c1_i32 : i32 to f32
    %c0_2 = arith.constant 0 : index
    %9 = arith.index_cast %c1_i32 : i32 to index
    %c0_3 = arith.constant 0 : index
    %c0_4 = arith.constant 0 : index
    %10 = vector.load %arg3[%c0_2, %9, %c0_3, %c0_4] : memref<1x4x16x16xf32, #tpu.memory_space<vmem>>, vector<1x1x16x16xf32>
    %11 = vector.shape_cast %10 : vector<1x1x16x16xf32> to vector<16x16xf32>
    %12 = vector.broadcast %8 : f32 to vector<16x16xf32>
    %13 = arith.mulf %11, %12 : vector<16x16xf32>
    %14 = arith.addf %7, %13 : vector<16x16xf32>
    %c2_i32 = arith.constant 2 : i32
    %15 = arith.sitofp %c2_i32 : i32 to f32
    %c0_5 = arith.constant 0 : index
    %16 = arith.index_cast %c2_i32 : i32 to index
    %c0_6 = arith.constant 0 : index
    %c0_7 = arith.constant 0 : index
    %17 = vector.load %arg3[%c0_5, %16, %c0_6, %c0_7] : memref<1x4x16x16xf32, #tpu.memory_space<vmem>>, vector<1x1x16x16xf32>
    %18 = vector.shape_cast %17 : vector<1x1x16x16xf32> to vector<16x16xf32>
    %19 = vector.broadcast %15 : f32 to vector<16x16xf32>
    %20 = arith.mulf %18, %19 : vector<16x16xf32>
    %21 = arith.addf %14, %20 : vector<16x16xf32>
    %c3_i32 = arith.constant 3 : i32
    %22 = arith.sitofp %c3_i32 : i32 to f32
    %c0_8 = arith.constant 0 : index
    %23 = arith.index_cast %c3_i32 : i32 to index
    %c0_9 = arith.constant 0 : index
    %c0_10 = arith.constant 0 : index
    %24 = vector.load %arg3[%c0_8, %23, %c0_9, %c0_10] : memref<1x4x16x16xf32, #tpu.memory_space<vmem>>, vector<1x1x16x16xf32>
    %25 = vector.shape_cast %24 : vector<1x1x16x16xf32> to vector<16x16xf32>
    %26 = vector.broadcast %22 : f32 to vector<16x16xf32>
    %27 = arith.mulf %25, %26 : vector<16x16xf32>
    %28 = arith.addf %21, %27 : vector<16x16xf32>
    %c4_i32 = arith.constant 4 : i32
    %c0_11 = arith.constant 0 : index
    %c0_12 = arith.constant 0 : index
    %c0_13 = arith.constant 0 : index
    %c0_14 = arith.constant 0 : index
    %29 = vector.load %arg4[%c0_11, %c0_12, %c0_13, %c0_14] : memref<1x1x16x16xf32, #tpu.memory_space<vmem>>, vector<1x1x16x16xf32>
    %30 = vector.shape_cast %29 : vector<1x1x16x16xf32> to vector<16x16xf32>
    %31 = vector.shape_cast %28 : vector<16x16xf32> to vector<1x1x16x16xf32>
    tpu.vector_store %arg4[%c0_11, %c0_12, %c0_13, %c0_14], %31 {strides = array<i32>} : memref<1x1x16x16xf32, #tpu.memory_space<vmem>>, vector<1x1x16x16xf32>,
    return
  }
  func.func @transform_0(%arg0: i32, %arg1: i32, %arg2: i32) -> (i32, i32, i32, i32) {
    %c0_i32 = arith.constant 0 : i32
    %c0_i32_0 = arith.constant 0 : i32
    return %arg0, %c0_i32, %arg1, %arg2 : i32, i32, i32, i32
  }
  func.func @transform_1(%arg0: i32, %arg1: i32, %arg2: i32) -> (i32, i32, i32, i32) {
    %c0_i32 = arith.constant 0 : i32
    %c0_i32_0 = arith.constant 0 : i32
    return %arg0, %c0_i32, %arg1, %arg2 : i32, i32, i32, i32
  }
}

</mosaic_0001>

<bundles_post_ra>
// kernel: tpu_custom_call.1
= control target key start
LH: loop header
LB: loop body
LE: loop exit
PB: predicated region body
PF: predicated region fallthrough
CT: control target
= control target key end

     0   :  { %6 = vsyncpa [#allocation3], 0  ;;  %s646_s0 = inlined_call_operand.hbm [shape: f32[2,4,16,16], index: 0, kind: input, shape index: {}]   ;;  %s647_s1 = inlined_call_operand.hbm [shape: f32[2,1,16,16], index: 1, kind: output, shape index: {}]  }
   0x1   :  { %8 = vsyncpa [#allocation3 + $0x1], 0 }
   0x2   :  { %9 = vsyncpa [#allocation4], 0 }
   0x3   :  { %11 = vsyncpa [#allocation4 + $0x1], 0  ;;  %s525_s6 = smov 0   ;;  %s527_s7 = smov 0  }
   0x4   :  { %s529_s8 = smov 0   ;;  %s531_s9 = smov 0  }
   0x5   :  { %s533_s10 = smov 0   ;;  %s535_s11 = smov 0  }
   0x6 LB: > { %s308_s12 = sadd.s32 4294967295, %s509_s11   ;;  %s309_s13 = sadd.s32 4294967294, %s509_s11   ;;  %s509_s11 = sphi %s535_s11, %s17_s11   ;;  %s505_s10 = sphi %s533_s10, %s656_s10   ;;  %s501_s9 = sphi %s531_s9, %s655_s9   ;;  %s497_s8 = sphi %s529_s8, %s654_s8   ;;  %s493_s7 = sphi %s527_s7, %s653_s7   ;;  %s489_s6 = sphi %s525_s6, %s652_s6  }
   0x7   : > { %s36_s14 = sadd.s32 1, %s505_s10  ;;  %s47_s15 = sadd.s32 1, %s497_s8 }
   0x8   : > { %p38_p0 = scmp.ge.s32.totalorder %s36_s14, 2  ;;  %p54_p1 = scmp.ne.s32.totalorder %s497_s8, %s493_s7 }
   0x9   : > { %p55_p2 = scmp.eq.s32.totalorder %s509_s11, 0  ;;  %p60_p3 = scmp.ne.s32.totalorder %s493_s7, %s489_s6 }
   0xa   : > { %s658_s14 = smov (%p38_p0, %s36_s14), 0  ;;  %p61_p5 = scmp.eq.s32.totalorder %s308_s12, 0 }
   0xb   : > { %p566_p4 = por %p55_p2, %p54_p1  ;;  %s40_s17 = ssub.s32 %s505_s10, %s658_s14 }
   0xc   : > { %p88_p6 = scmp.eq.s32.totalorder %s308_s12, 1  ;;  %p45_p7 = scmp.eq.s32.totalorder %s40_s17, 0 }
   0xd   : > { %p572_p8 = por %p61_p5, %p60_p3  ;;  %p94_p10 = scmp.eq.s32.totalorder %s309_s13, 1 }
   0xe   : > { %p576_p9 = por %p88_p6, %p54_p1  ;;  %p311_p12 = scmp.ge.s32.totalorder %s509_s11, 2 }
   0xf   : > { %s581_s20 = scalar_select %p45_p7, %s497_s8, %s47_s15  }
  0x10   : > { %p583_p11 = por %p94_p10, %p60_p3  ;;  %p343_p13 = scmp.lt.s32.totalorder %s509_s11, 2 }
  0x11   : > { %s114_s22 = sand.u32 1, %s497_s8   ;;  %s329_s24 = sshll.u32 %s505_s10, 6 }
  0x12   : > { %s312_s23 = sshll.u32 %s114_s22, 6  ;;  %s126_s27 = scalar_lea.hbm %s646_s0, %s329_s24 }
  0x13   : > { %s118_s28 = scalar_lea.vmem [#allocation2], %s312_s23  ;;  %s127_s30 = sshll.u32 %s126_s27, 4  ;;  %s128_s30 = int_to_ptr.hbm [resolvable:$true] %s127_s30 }
  0x14   : > { %s129_s29 = sshll.u32 %s118_s28, 4  ;;  %p336_p0 = pnand %p343_p13, %p566_p4  ;;  %s130_s29 = int_to_ptr.vmem [resolvable:$true] %s129_s29 }
  0x15   : > { %p315_p1 = scmp.ge.s32.totalorder %s509_s11, 1  ;;  %s115_s2 = scalar_lea.sflag [#allocation3], %s114_s22 }
  0x16   : > { %s511_s3 = smov 128   ;;  %s512_s4 = smov 8  }
  0x17   : > { %338 = dma.hbm_to_vmem [thread:$0]  (!%p336_p0), %s128_s30, 1024, %s130_s29, %s115_s2, %s511_s3, %s511_s3, %s512_s4  }
  0x18   : > { %p137_p2 = scmp.lt.s32.totalorder %s509_s11, 3 }
  0x1a   : > { %p138_p3 = pnand %p315_p1, %p137_p2 }
  0x1b   : > { %s599_s5 = sand.u32 (!%p138_p3), 1, %s493_s7  }
  0x1c   : > { %141 = sbr.rel (%p138_p3) target bundleno = 51 (0x33), region = 24  ;;  %s316_s12 = sshll.u32 (!%p138_p3), %s599_s5, 6 }
  0x1d   : > { %s144_s13 = scalar_lea.sflag (!%p138_p3), [#allocation3], %s599_s5  ;;  %s147_s15 = scalar_lea.vmem (!%p138_p3), [#allocation2], %s316_s12 }
  0x21   : > { %480 = dma.done.wait (%p572_p8), %s144_s13, 1024  }
  0x22   : > { %482 = vsyncadd (%p572_p8), %s144_s13, 4294966272  ;;  %s317_s16 = sshll.u32 %s599_s5, 4  ;;  %s330_s17 = sshll.u32 %s501_s9, 4  ;;  %v169_v0 = vld [vmem:[%s147_s15] sm:$0xff]  ;;  %v318_v1 = vld [vmem:[%s147_s15 + $0x10] sm:$0xff]  ;;  %vm194_vm0 = vcmask 130048  }
  0x23   : > { %v320_v2 = vld [vmem:[%s147_s15 + $0x20] sm:$0xff]  ;;  %v171_v3 = vmul.f32 0.0, %v169_v0  ;;  %v322_v5 = vld [vmem:[%s147_s15 + $0x30] sm:$0xff]  ;;  %v170_v6 = vld [vmem:[%s147_s15 + $0x8] sm:$0xff]  ;;  %s212_s24 = scalar_lea.hbm %s647_s1, %s330_s17  ;;  %s166_s9 = scalar_lea.vmem [#allocation5], %s317_s16 }
  0x24   : > { %v183_v4 = vmul.f32 2.0, %v320_v2  ;;  %v319_v7 = vld [vmem:[%s147_s15 + $0x18] sm:$0xff]  ;;  %v172_v8 = vmul.f32 0.0, %v170_v6  ;;  %v321_v9 = vld [vmem:[%s147_s15 + $0x28] sm:$0xff]  ;;  %v190_v12 = vmul.f32 3.0, %v322_v5  ;;  %s213_s18 = sshll.u32 %s166_s9, 4  ;;  %s214_s18 = int_to_ptr.vmem [resolvable:$true] %s213_s18 }
  0x25   : > { %v323_v10 = vld [vmem:[%s147_s15 + $0x38] sm:$0xff]  ;;  %v178_v11 = vadd.f32 %v318_v1, %v171_v3  ;;  %v184_v13 = vmul.f32 2.0, %v321_v9  ;;  %s215_s25 = sshll.u32 %s212_s24, 4  ;;  %s198_s26 = scalar_lea.sflag [#allocation4], %s599_s5  ;;  %s216_s25 = int_to_ptr.hbm [resolvable:$true] %s215_s25 }
  0x26   : > { %v179_v14 = vadd.f32 %v319_v7, %v172_v8  ;;  %v191_v15 = vmul.f32 3.0, %v323_v10  ;;  %s441_s27 = sshra.s32 %s216_s25, 4  ;;  %s447_s2 = scalar_lea.hbm %s647_s1, 32  ;;  %s442_s27 = int_to_ptr.hbm [resolvable:$true] %s441_s27 }
  0x27   : > { %v185_v16 = vadd.f32 %v183_v4, %v178_v11  ;;  %s443_s28 = scalar_lea.hbm %s442_s27, 16  ;;  %p448_p7 = scmp.lt.s32.totalorder %s442_s27, %s647_s1 }
  0x28   : > { %v186_v17 = vadd.f32 %v184_v13, %v179_v14  ;;  %p444_p4 = scmp.ne.s32.totalorder %s442_s27, %s443_s28  ;;  %p449_p8 = scmp.lt.s32.totalorder %s447_s2, %s443_s28 }
  0x29   : > { %v192_v18 = vadd.f32 %v190_v12, %v185_v16 }
  0x2a   : > { %v193_v19 = vadd.f32 %v191_v15, %v186_v17  ;;  %p445_p5 = pnand %p444_p4, %p576_p9  ;;  %p450_p10 = por %p449_p8, %p448_p7 }
  0x2b   : > { %195 = vst.msk [vmem:[%s166_s9] sm:$0xff] %vm194_vm0, %v192_v18 }
  0x2c   : > { %196 = vst.msk [vmem:[%s166_s9 + $0x8] sm:$0xff] %vm194_vm0, %v193_v19  ;;  %p446_p6 = pneg %p445_p5 }
  0x2e   : > { %p451_p13 = pnand %p450_p10, %p446_p6 }
  0x30   : > { %454 = shalt.err (!%p451_p13)
}
  0x31   : > { %s513_s5 = smov 128   ;;  %s514_s12 = smov 8  }
  0x32   : > { %333 = dma.vmem_to_hbm [thread:$0]  (%p576_p9), %s214_s18, 256, %s216_s25, %s198_s26, %s513_s5, %s513_s5, %s514_s12  }
  0x33 PF: > { %s230_s13 = sand.u32 1, %s489_s6   ;;  %p340_p0 = pnand %p311_p12, %p583_p11 }
  0x34   : > { %s231_s15 = scalar_lea.sflag [#allocation4], %s230_s13 }
  0x35   : > { %p341_p1 = pneg %p340_p0 }
  0x37   : > { %484 = dma.done.wait (%p341_p1), %s231_s15, 256  }
  0x38   : > { %486 = vsyncadd (%p341_p1), %s231_s15, 4294967040  ;;  %s17_s11 = sadd.s32 1, %s509_s11   ;;  %s652_s6 = smov %s493_s7 }
  0x39   : > { %p14_p2 = scmp.ge.s32.totalorder %s17_s11, 4   ;;  %s653_s7 = smov %s497_s8 }
  0x3a   : > { %s654_s8 = smov %s581_s20  ;;  %s655_s9 = smov %s505_s10 }
  0x3b   : > { %s656_s10 = smov %s658_s14  ;;  %16 = sbr.rel (!%p14_p2) target bundleno = 6 (0x6), region = 72 }
  0x40   :  { %237 = vsyncpa [#allocation3], 1 }
  0x41   :  { %239 = vsyncpa [#allocation3 + $0x1], 1 }
  0x42   :  { %240 = vsyncpa [#allocation4], 1 }
  0x43   :  { %242 = vsyncpa [#allocation4 + $0x1], 1 }

</bundles_post_ra>
